<compile_context>
chip_gen: v7x
topology: tpu7x:2x2x1
jax: 0.10.0
libtpu: 0.0.40
codegen_flags: <defaults>
</compile_context>

<pallas_src>
import functools

import jax
import jax.numpy as jnp
from jax.experimental import pallas as pl
from jax.experimental.pallas import tpu as pltpu


def _vmem_capacity_bytes():
    """Per-core VMEM capacity; falls back to the v7x value (safe lower bound)."""
    try:
        return int(pltpu.get_tpu_info().vmem_capacity_bytes)
    except Exception:
        return 64 * 1024 * 1024


def _partials_kernel(p_ref, t_ref, out_ref, *, rows_total, need_mask):
    """Per-(image, row-tile) class-1 indicator partial counts.

    p_ref  : (2, TR, L) both pred channels of the current row tile
    t_ref  : (TR, L)    target tile (int or bool)
    out_ref: (8, 128)   lanes 0,1,2 of sublane 0 hold (n11, n_pred1, n_tgt1)
    """
    j = pl.program_id(1)

    p0 = p_ref[0]
    p1 = p_ref[1]
    if p0.dtype not in (jnp.float32, jnp.bfloat16):
        # odd float dtypes: compare in f32 (in-register cast only)
        p0 = p0.astype(jnp.float32)
        p1 = p1.astype(jnp.float32)
    # argmax over the 2 channels: class 1 only if strictly greater (ties -> class 0).
    pred1 = p1 > p0

    t = t_ref[...]
    tgt1 = t if t.dtype == jnp.bool_ else (t == 1)

    if need_mask:
        # Ragged last row tile: rows >= rows_total are out-of-bounds garbage -> mask.
        tr = t_ref.shape[0]
        row_ids = j * tr + jax.lax.broadcasted_iota(jnp.int32, t_ref.shape, 0)
        valid = row_ids < rows_total
        pred1 = jnp.logical_and(pred1, valid)
        tgt1 = jnp.logical_and(tgt1, valid)

    n11 = jnp.sum(jnp.logical_and(pred1, tgt1).astype(jnp.int32), keepdims=True)
    np1 = jnp.sum(pred1.astype(jnp.int32), keepdims=True)
    nt1 = jnp.sum(tgt1.astype(jnp.int32), keepdims=True)

    lane = jax.lax.broadcasted_iota(jnp.int32, out_ref.shape, 1)
    out_ref[...] = (
        jnp.where(lane == 0, n11, 0)
        + jnp.where(lane == 1, np1, 0)
        + jnp.where(lane == 2, nt1, 0)
    )


def yolop_iou_loss(pred, target):
    """Pallas equivalent of YOLOPIoULoss.forward(pred, target) -> scalar float32."""
    N, C, H, W = pred.shape
    assert C == 2, "JaccardIndex(2): pred must have 2 class channels"
    P = H * W

    # Prefer a free lane-dense flat view: largest multiple of 128 (<= 2048) dividing P.
    L = next((c for c in range(2048, 0, -128) if P % c == 0), None)
    if L is not None:
        rows = P // L
        pred_v = pred.reshape(N, 2, rows, L)   # free contiguous reshape, no pad
        tgt_v = target.reshape(N, rows, L)
    else:
        # Native NCHW tiling with full-W rows; zero copies, any H/W.
        rows, L = H, W
        pred_v = pred
        tgt_v = target

    pred_bytes = jnp.dtype(pred.dtype).itemsize
    tgt_bytes = jnp.dtype(target.dtype).itemsize

    cap = _vmem_capacity_bytes()
    block_budget = (cap * 3) // 8   # ~24 MiB on v7x (64 MiB VMEM), ~48 MiB on v5e/v6e
    vmem_limit = (cap * 5) // 8     # ~40 MiB on v7x, ~80 MiB on v5e/v6e

    # Resident VMEM per tile row: double-buffered 2-channel pred + double-buffered tgt.
    bytes_per_row = L * (2 * 2 * pred_bytes + 2 * tgt_bytes)
    tr_cap = max(32, (block_budget // bytes_per_row) // 32 * 32)

    TR = rows if rows <= tr_cap else tr_cap      # full extent or multiple of 32
    n_tiles = pl.cdiv(rows, TR)
    need_mask = (rows % TR) != 0                 # ragged last tile -> mask in kernel

    kernel = functools.partial(_partials_kernel, rows_total=rows, need_mask=need_mask)

    counts = pl.pallas_call(
        kernel,
        out_shape=jax.ShapeDtypeStruct((N, n_tiles, 8, 128), jnp.int32),
        grid_spec=pltpu.PrefetchScalarGridSpec(
            num_scalar_prefetch=0,
            grid=(N, n_tiles),
            in_specs=[
                # both channels of image n, row tile j (native memory, no copies)
                pl.BlockSpec((None, 2, TR, L), lambda n, j: (n, 0, j, 0)),
                pl.BlockSpec((None, TR, L), lambda n, j: (n, j, 0)),
            ],
            # per-(n, j) partial counts: no cross-step accumulation needed
            out_specs=pl.BlockSpec((None, None, 8, 128), lambda n, j: (n, j, 0, 0)),
        ),
        compiler_params=pltpu.CompilerParams(
            # no reduction axis -> both dims parallel; keeps both v7x TCs busy at N==1
            dimension_semantics=("parallel", "parallel"),
            vmem_limit_bytes=int(vmem_limit),
        ),
    )(pred_v, tgt_v)

    # Exact integer epilogue (int32; only overflows if N*H*W > 2^31).
    n11 = jnp.sum(counts[:, :, 0, 0])
    np1 = jnp.sum(counts[:, :, 0, 1])
    nt1 = jnp.sum(counts[:, :, 0, 2])
    total = N * P

    c11 = n11
    c01 = np1 - n11                 # target 0, pred 1
    c10 = nt1 - n11                 # target 1, pred 0
    c00 = total - np1 - nt1 + n11   # target 0, pred 0

    union0 = c00 + c01 + c10
    union1 = c11 + c01 + c10
    s0 = jnp.where(union0 == 0, 0.0,
                   c00.astype(jnp.float32) / union0.astype(jnp.float32))
    s1 = jnp.where(union1 == 0, 0.0,
                   c11.astype(jnp.float32) / union1.astype(jnp.float32))
    return (0.5 * (s0 + s1)).astype(jnp.float32)


def _reference_iou(pred, target):
    """Pure-JAX reference of torchmetrics.JaccardIndex(2) for verification."""
    pred_cls = jnp.argmax(pred, axis=1).reshape(-1)
    tgt = target.reshape(-1).astype(jnp.int32)
    scores = []
    for c in range(2):
        inter = jnp.sum((pred_cls == c) & (tgt == c)).astype(jnp.float32)
        union = (jnp.sum(pred_cls == c) + jnp.sum(tgt == c)).astype(jnp.float32) - inter
        scores.append(jnp.where(union == 0.0, 0.0, inter / union))
    return 0.5 * (scores[0] + scores[1])


if __name__ == "__main__":
    key = jax.random.PRNGKey(0)
    k_pred, k_tgt = jax.random.split(key)

    # Primary small shape (lane-dense flat path).
    N, C, H, W = 2, 2, 16, 16
    pred = jax.random.uniform(k_pred, (N, C, H, W), dtype=jnp.float32)
    target = jax.random.randint(k_tgt, (N, H, W), 0, 2, dtype=jnp.int32)

    loss_fn = jax.jit(yolop_iou_loss)
    value = loss_fn(pred, target)
    jax.block_until_ready(value)
    ref = _reference_iou(pred, target)
    assert jnp.allclose(value, ref, atol=1e-6), (value, ref)

    # Secondary shape exercising the native-NCHW path (H*W not a multiple of 128).
    k2p, k2t = jax.random.split(jax.random.PRNGKey(0))
    pred2 = jax.random.uniform(k2p, (1, 2, 12, 20), dtype=jnp.float32)
    target2 = jax.random.randint(k2t, (1, 12, 20), 0, 2, dtype=jnp.int32)
    value2 = jax.jit(yolop_iou_loss)(pred2, target2)
    jax.block_until_ready(value2)
    ref2 = _reference_iou(pred2, target2)
    assert jnp.allclose(value2, ref2, atol=1e-6), (value2, ref2)

    print("KERNEL_OK")
</pallas_src>

<mosaic_0001>
module attributes {stable_mosaic.version = 11 : i64} {
  func.func @_partials_kernel(%arg0: i32, %arg1: i32, %arg2: memref<1x2x1x256xf32, #tpu.memory_space<vmem>>, %arg3: memref<1x1x256xi32, #tpu.memory_space<vmem>>, %arg4: memref<1x1x8x128xi32, #tpu.memory_space<vmem>>) attributes {dimension_semantics = [#tpu.dimension_semantics<parallel>, #tpu.dimension_semantics<parallel>], iteration_bounds = array<i64: 2, 1>, scalar_prefetch = 0 : i64, scratch_operands = 0 : i64, tpu.core_type = #tpu.core_type<tc>, window_params = [{transform_indices = @transform_0, window_bounds = array<i64: 1, 2, 1, 256>}, {transform_indices = @transform_1, window_bounds = array<i64: 1, 1, 256>}, {transform_indices = @transform_2, window_bounds = array<i64: 1, 1, 8, 128>}]} {
    %c0 = arith.constant 0 : index
    %c0_0 = arith.constant 0 : index
    %c0_1 = arith.constant 0 : index
    %c0_2 = arith.constant 0 : index
    %0 = vector.load %arg2[%c0, %c0_0, %c0_1, %c0_2] : memref<1x2x1x256xf32, #tpu.memory_space<vmem>>, vector<1x1x1x256xf32>
    %1 = vector.shape_cast %0 : vector<1x1x1x256xf32> to vector<1x256xf32>
    %c0_3 = arith.constant 0 : index
    %c1 = arith.constant 1 : index
    %c0_4 = arith.constant 0 : index
    %c0_5 = arith.constant 0 : index
    %2 = vector.load %arg2[%c0_3, %c1, %c0_4, %c0_5] : memref<1x2x1x256xf32, #tpu.memory_space<vmem>>, vector<1x1x1x256xf32>
    %3 = vector.shape_cast %2 : vector<1x1x1x256xf32> to vector<1x256xf32>
    %4 = arith.cmpf ogt, %3, %1 : vector<1x256xf32>
    %c0_6 = arith.constant 0 : index
    %c0_7 = arith.constant 0 : index
    %c0_8 = arith.constant 0 : index
    %5 = vector.load %arg3[%c0_6, %c0_7, %c0_8] : memref<1x1x256xi32, #tpu.memory_space<vmem>>, vector<1x1x256xi32>
    %6 = vector.shape_cast %5 : vector<1x1x256xi32> to vector<1x256xi32>
    %c1_i32 = arith.constant 1 : i32
    %7 = vector.broadcast %c1_i32 : i32 to vector<1x256xi32>
    %8 = arith.cmpi eq, %6, %7 : vector<1x256xi32>
    %9 = arith.andi %4, %8 : vector<1x256xi1>
    %10 = arith.extui %9 : vector<1x256xi1> to vector<1x256xi32>
    %11 = vector.shape_cast %10 : vector<1x256xi32> to vector<1x1x256xi32>
    %cst = arith.constant dense<0> : vector<1xi32>
    %12 = vector.multi_reduction <add>, %11, %cst [1, 2] : vector<1x1x256xi32> to vector<1xi32>
    %13 = vector.shape_cast %12 : vector<1xi32> to vector<1x1x1xi32>
    %14 = vector.extract %13[0, 0, 0] : i32 from vector<1x1x1xi32>
    %15 = vector.broadcast %14 : i32 to vector<1x1xi32>
    %16 = arith.extui %4 : vector<1x256xi1> to vector<1x256xi32>
    %17 = vector.shape_cast %16 : vector<1x256xi32> to vector<1x1x256xi32>
    %cst_9 = arith.constant dense<0> : vector<1xi32>
    %18 = vector.multi_reduction <add>, %17, %cst_9 [1, 2] : vector<1x1x256xi32> to vector<1xi32>
    %19 = vector.shape_cast %18 : vector<1xi32> to vector<1x1x1xi32>
    %20 = vector.extract %19[0, 0, 0] : i32 from vector<1x1x1xi32>
    %21 = vector.broadcast %20 : i32 to vector<1x1xi32>
    %22 = arith.extui %8 : vector<1x256xi1> to vector<1x256xi32>
    %23 = vector.shape_cast %22 : vector<1x256xi32> to vector<1x1x256xi32>
    %cst_10 = arith.constant dense<0> : vector<1xi32>
    %24 = vector.multi_reduction <add>, %23, %cst_10 [1, 2] : vector<1x1x256xi32> to vector<1xi32>
    %25 = vector.shape_cast %24 : vector<1xi32> to vector<1x1x1xi32>
    %26 = vector.extract %25[0, 0, 0] : i32 from vector<1x1x1xi32>
    %27 = vector.broadcast %26 : i32 to vector<1x1xi32>
    %28 = tpu.iota {dimensions = array<i32: 1>} : vector<8x128xi32>
    %c0_i32 = arith.constant 0 : i32
    %29 = vector.broadcast %c0_i32 : i32 to vector<8x128xi32>
    %30 = arith.cmpi eq, %28, %29 : vector<8x128xi32>
    %c0_i32_11 = arith.constant 0 : i32
    %31 = vector.shape_cast %15 : vector<1x1xi32> to vector<1x1xi32>
    %32 = vector.broadcast %31 : vector<1x1xi32> to vector<8x128xi32>
    %33 = vector.broadcast %c0_i32_11 : i32 to vector<8x128xi32>
    %34 = arith.select %30, %32, %33 : vector<8x128xi1>, vector<8x128xi32>
    %c1_i32_12 = arith.constant 1 : i32
    %35 = vector.broadcast %c1_i32_12 : i32 to vector<8x128xi32>
    %36 = arith.cmpi eq, %28, %35 : vector<8x128xi32>
    %c0_i32_13 = arith.constant 0 : i32
    %37 = vector.shape_cast %21 : vector<1x1xi32> to vector<1x1xi32>
    %38 = vector.broadcast %37 : vector<1x1xi32> to vector<8x128xi32>
    %39 = vector.broadcast %c0_i32_13 : i32 to vector<8x128xi32>
    %40 = arith.select %36, %38, %39 : vector<8x128xi1>, vector<8x128xi32>
    %41 = arith.addi %34, %40 : vector<8x128xi32>
    %c2_i32 = arith.constant 2 : i32
    %42 = vector.broadcast %c2_i32 : i32 to vector<8x128xi32>
    %43 = arith.cmpi eq, %28, %42 : vector<8x128xi32>
    %c0_i32_14 = arith.constant 0 : i32
    %44 = vector.shape_cast %27 : vector<1x1xi32> to vector<1x1xi32>
    %45 = vector.broadcast %44 : vector<1x1xi32> to vector<8x128xi32>
    %46 = vector.broadcast %c0_i32_14 : i32 to vector<8x128xi32>
    %47 = arith.select %43, %45, %46 : vector<8x128xi1>, vector<8x128xi32>
    %48 = arith.addi %41, %47 : vector<8x128xi32>
    %c0_15 = arith.constant 0 : index
    %c0_16 = arith.constant 0 : index
    %c0_17 = arith.constant 0 : index
    %c0_18 = arith.constant 0 : index
    %49 = vector.load %arg4[%c0_15, %c0_16, %c0_17, %c0_18] : memref<1x1x8x128xi32, #tpu.memory_space<vmem>>, vector<1x1x8x128xi32>
    %50 = vector.shape_cast %49 : vector<1x1x8x128xi32> to vector<8x128xi32>
    %51 = vector.shape_cast %48 : vector<8x128xi32> to vector<1x1x8x128xi32>
    tpu.vector_store %arg4[%c0_15, %c0_16, %c0_17, %c0_18], %51 {strides = array<i32>} : memref<1x1x8x128xi32, #tpu.memory_space<vmem>>, vector<1x1x8x128xi32>,
    return
  }
  func.func @transform_0(%arg0: i32, %arg1: i32) -> (i32, i32, i32, i32) {
    %c0_i32 = arith.constant 0 : i32
    %c0_i32_0 = arith.constant 0 : i32
    %c0_i32_1 = arith.constant 0 : i32
    return %arg0, %c0_i32, %arg1, %c0_i32_0 : i32, i32, i32, i32
  }
  func.func @transform_1(%arg0: i32, %arg1: i32) -> (i32, i32, i32) {
    %c0_i32 = arith.constant 0 : i32
    %c0_i32_0 = arith.constant 0 : i32
    return %arg0, %arg1, %c0_i32 : i32, i32, i32
  }
  func.func @transform_2(%arg0: i32, %arg1: i32) -> (i32, i32, i32, i32) {
    %c0_i32 = arith.constant 0 : i32
    %c0_i32_0 = arith.constant 0 : i32
    %c0_i32_1 = arith.constant 0 : i32
    return %arg0, %arg1, %c0_i32, %c0_i32_0 : i32, i32, i32, i32
  }
}

</mosaic_0001>

<bundles_post_ra>
// kernel: yolop_iou_loss.1
= control target key start
LH: loop header
LB: loop body
LE: loop exit
PB: predicated region body
PF: predicated region fallthrough
CT: control target
= control target key end

     0   :  { %s496_s9 = smov 0   ;;  %s498_s10 = smov 0   ;;  %s545_s0 = inlined_call_operand.vmem [shape: f32[2,2,1,256], index: 0, kind: input, shape index: {}]   ;;  %s546_s1 = inlined_call_operand.vmem [shape: s32[2,1,256], index: 1, kind: input, shape index: {}]   ;;  %s547_s2 = inlined_call_operand.vmem [shape: s32[2,1,8,128], index: 2, kind: output, shape index: {}]  }
   0x1   :  { %s500_s11 = smov 0  }
   0x2 LB: > { %s24_s12 = sadd.s32 1, %s474_s10  ;;  %p418_p0 = scmp.ge.s32.totalorder %s478_s11, 1  ;;  %s478_s11 = sphi %s500_s11, %s12_s11   ;;  %s474_s10 = sphi %s498_s10, %s549_s10   ;;  %s470_s9 = sphi %s496_s9, %s548_s9  }
   0x3   : > { %p26_p1 = scmp.ge.s32.totalorder %s24_s12, 2  ;;  %p146_p2 = scmp.lt.s32.totalorder %s478_s11, 3 }
   0x5   : > { %s551_s12 = smov (%p26_p1, %s24_s12), 0  ;;  %p147_p3 = pnand %p418_p0, %p146_p2 }
   0x6   : > { %p181_p4 = scmp.lt.s32.totalorder (!%p147_p3), %s470_s9, 1  ;;  %v212_v0 = vlaneseq (!%p147_p3)  ;;  %vm220_vm2 = vcmask (!%p147_p3), 1040384   ;;  %v480_v7 = vmov (!%p147_p3), 0  }
   0x7   : > { %150 = sbr.rel (%p147_p3) target bundleno = 252 (0xfc), region = 28 }
   0x8   : > { %v213_v1 = vshrl.u32 (!%p147_p3), %v212_v0, 7 }
   0xa   : > { %v214_v2 = vsub.s32 (!%p147_p3), 0, %v213_v1  ;;  %v218_v3 = vsub.s32 (!%p147_p3), 1, %v213_v1 }
   0xe   : > { %s553_s9 = smov (!%p181_p4, %s470_s9), 1 }
   0xf   : > { %s419_s13 = sshll.u32 %s553_s9, 2  ;;  %s420_s14 = sshll.u32 %s553_s9, 1 }
  0x10   : > { %s188_s17 = scalar_lea.vmem %s545_s0, %s419_s13  ;;  %s196_s20 = scalar_lea.vmem %s546_s1, %s420_s14 }
  0x11   : > { %v204_v4 = vld [vmem:[%s188_s17] sm:$0x3]  ;;  %v422_v5 = vld [vmem:[%s188_s17 + $0x2] sm:$0x3]  ;;  %s421_s23 = sshll.u32 %s553_s9, 3 }
  0x12   : > { %v208_v6 = vld [vmem:[%s196_s20] sm:$0x3]  ;;  %vm207_vm0 = vcmp.gt.f32.partialorder %v422_v5, %v204_v4  ;;  %s203_s27 = scalar_lea.vmem %s547_s2, %s421_s23 }
  0x13   : > { %vm209_vm1 = vcmp.eq.s32.totalorder %v208_v6, 1  ;;  %v243_v8 = vsel %vm207_vm0, 1, %v480_v7 }
  0x14   : > { %vm210_vm3 = vmand %vm207_vm0, %vm209_vm1  ;;  %v274_v9 = vsel %vm209_vm1, 1, %v480_v7  ;;  %v247_v10 = vrot.slane %v243_v8, %v214_v2  ;;  %v251_v11 = vrot.slane %v243_v8, %v218_v3 }
  0x15   : > { %v211_v12 = vsel %vm210_vm3, 1, %v480_v7  ;;  %v278_v13 = vrot.slane %v274_v9, %v214_v2  ;;  %v282_v16 = vrot.slane %v274_v9, %v218_v3 }
  0x16   : > { %v215_v14 = vrot.slane %v211_v12, %v214_v2  ;;  %v219_v15 = vrot.slane %v211_v12, %v218_v3  ;;  %v252_v17 = vsel %vm220_vm2, %v247_v10, 0  ;;  %v253_v18 = vsel %vm220_vm2, %v251_v11, 0 }
  0x17   : > { %v283_v19 = vsel %vm220_vm2, %v278_v13, 0  ;;  %v254_v20 = vadd.s32 %v253_v18, %v252_v17  ;;  %v284_v23 = vsel %vm220_vm2, %v282_v16, 0  ;;  %v306_v11 = vand.u32 127, %v212_v0 }
  0x18   : > { %v221_v21 = vsel %vm220_vm2, %v215_v14, 0  ;;  %v222_v22 = vsel %vm220_vm2, %v219_v15, 0  ;;  %v285_v27 = vadd.s32 %v284_v23, %v283_v19 }
  0x19   : > { %v223_v24 = vadd.s32 %v222_v22, %v221_v21  ;;  %v256_v25 = vshrl.u32 %v254_v20, 16  ;;  %v255_v26 = vand.u32 65535, %v254_v20  ;;  %vm307_vm4 = vcmp.eq.s32.totalorder %v306_v11, 0 }
  0x1a   : > { %v287_v34 = vshrl.u32 %v285_v27, 16  ;;  %v286_v35 = vand.u32 65535, %v285_v27  ;;  %vm310_vm5 = vcmp.eq.s32.totalorder %v306_v11, 1  ;;  %vm314_vm6 = vcmp.eq.s32.totalorder %v306_v11, 2 }
  0x1b   : > { %v225_v28 = vshrl.u32 %v223_v24, 16  ;;  %v224_v29 = vand.u32 65535, %v223_v24  ;;  %v258_v30 = vcvt.s32.f32 %v256_v25  ;;  %v257_v31 = vcvt.s32.f32 %v255_v26 }
  0x1c   : > { %v289_v36 = vcvt.s32.f32 %v287_v34  ;;  %v288_v37 = vcvt.s32.f32 %v286_v35 }
  0x1d   : > { %261 = vadd.xlane.f32.xlu0 %v258_v30  ;;  %259 = vadd.xlane.f32.xlu1 %v257_v31  ;;  %v227_v32 = vcvt.s32.f32 %v225_v28  ;;  %v226_v33 = vcvt.s32.f32 %v224_v29 }
  0x21   : > { %230 = vadd.xlane.f32.xlu0 %v227_v32  ;;  %228 = vadd.xlane.f32.xlu1 %v226_v33 }
  0x25   : > { %292 = vadd.xlane.f32.xlu0 %v289_v36  ;;  %290 = vadd.xlane.f32.xlu1 %v288_v37 }
  0xaa   : > { %v262_v38 = vpop.xlane.xlu0 %261  ;;  %v260_v39 = vpop.xlane.xlu1 %259 }
  0xab   : > { %v264_v40 = vcvt.f32.s32 %v262_v38  ;;  %v263_v41 = vcvt.f32.s32 %v260_v39 }
  0xad   : > { %v265_v42 = vshll.u32 %v264_v40, 16 }
  0xae   : > { %v231_v43 = vpop.xlane.xlu0 %230  ;;  %v229_v44 = vpop.xlane.xlu1 %228 }
  0xaf   : > { %v266_v45 = vadd.s32 %v265_v42, %v263_v41  ;;  %v233_v46 = vcvt.f32.s32 %v231_v43  ;;  %v232_v47 = vcvt.f32.s32 %v229_v44 }
  0xb1   : > { %v267_v48 = vrot.slane %v266_v45, 4  ;;  %v234_v49 = vshll.u32 %v233_v46, 16 }
  0xb2   : > { %v293_v50 = vpop.xlane.xlu0 %292  ;;  %v291_v51 = vpop.xlane.xlu1 %290 }
  0xb3   : > { %v268_v52 = vadd.s32 %v267_v48, %v266_v45  ;;  %v235_v53 = vadd.s32 %v234_v49, %v232_v47  ;;  %v295_v54 = vcvt.f32.s32 %v293_v50  ;;  %v294_v55 = vcvt.f32.s32 %v291_v51 }
  0xb5   : > { %v236_v56 = vrot.slane %v235_v53, 4  ;;  %v296_v57 = vshll.u32 %v295_v54, 16  ;;  %v269_v58 = vrot.slane %v268_v52, 2 }
  0xb7   : > { %v297_v59 = vadd.s32 %v296_v57, %v294_v55  ;;  %v237_v60 = vadd.s32 %v236_v56, %v235_v53  ;;  %v270_v61 = vadd.s32 %v269_v58, %v268_v52 }
  0xb9   : > { %v298_v62 = vrot.slane %v297_v59, 4  ;;  %v238_v63 = vrot.slane %v237_v60, 2  ;;  %v271_v3 = vrot.slane %v270_v61, 1 }
  0xbb   : > { %v299_v1 = vadd.s32 %v298_v62, %v297_v59  ;;  %v239_v2 = vadd.s32 %v238_v63, %v237_v60  ;;  %v272_v8 = vadd.s32 %v271_v3, %v270_v61 }
  0xbd   : > { %v240_v4 = vrot.slane %v239_v2, 1  ;;  %v300_v5 = vrot.slane %v299_v1, 2 }
  0xbf   : > { %v241_v6 = vadd.s32 %v240_v4, %v239_v2  ;;  %v301_v7 = vadd.s32 %v300_v5, %v299_v1 }
  0xc1   : > { %425 = vpush %v241_v6  ;;  %v302_v9 = vrot.slane %v301_v7, 1 }
  0xc2   : > { %427 = vpush %v272_v8 }
  0xc3   : > { %v303_v10 = vadd.s32 %v302_v9, %v301_v7 }
  0xc5   : > { %429 = vpush %v303_v10 }
  0xf2   : > { %s426_s21 = spop %425 }
  0xf3   : > { %v308_v12 = vstv %s426_s21  ;;  %s428_s22 = spop %427 }
  0xf4   : > { %v309_v13 = vsel %vm307_vm4, %v308_v12, 0  ;;  %v311_v14 = vstv %s428_s22 }
  0xf5   : > { %v312_v15 = vsel %vm310_vm5, %v311_v14, 0 }
  0xf6   : > { %s430_s24 = spop %429  ;;  %v313_v16 = vadd.s32 %v312_v15, %v309_v13 }
  0xf7   : > { %v315_v17 = vstv %s430_s24 }
  0xf8   : > { %v316_v18 = vsel %vm314_vm6, %v315_v17, 0 }
  0xf9   : > { %v317_v19 = vadd.s32 %v316_v18, %v313_v16 }
  0xfb   : > { %318 = vst [vmem:[%s203_s27] sm:$0xff] %v317_v19 }
  0xfc PF: > { %s12_s11 = sadd.s32 1, %s478_s11   ;;  %s548_s9 = smov %s474_s10 }
  0xfd   : > { %p9_p5 = scmp.ge.s32.totalorder %s12_s11, 4   ;;  %s549_s10 = smov %s551_s12 }
  0xff   :  { %11 = sbr.rel (!%p9_p5) target bundleno = 2 (0x2), region = 62 }

</bundles_post_ra>
